<compile_context>
chip_gen: v6e
topology: v6e:2x2x1
jax: 0.10.0
libtpu: 0.0.40
codegen_flags: <defaults>
</compile_context>

<pallas_src>
import functools

import jax
import jax.numpy as jnp
from jax.experimental import pallas as pl
from jax.experimental.pallas import tpu as pltpu

LANE = 128


def _round_up(v, m):
    return (v + m - 1) // m * m


def _physical_vmem_bytes():
    """Per-TensorCore VMEM capacity; conservative (v7x) fallback."""
    try:
        info = pltpu.get_tpu_info()
        cap = getattr(info, "vmem_capacity_bytes", None)
        if cap:
            return int(cap)
    except Exception:
        pass
    return 64 * 1024 * 1024


# ----------------------------------------------------------------------------
# Pallas kernel: fully fused GCN forward (single invocation, whole-array refs)
#   refs = (adj, x, w0, b0, w1, b1, ..., w_{L-1}, b_{L-1}, out)
# All operands are lane-padded to multiples of 128 by the wrapper.
# ----------------------------------------------------------------------------
def fused_gcn_kernel(*refs, layer_cfg):
    adj_ref, x_ref = refs[0], refs[1]
    o_ref = refs[-1]
    wb_refs = refs[2:-1]

    h = x_ref[...]                          # bf16 [N_pad, F0_pad]

    n_layers = len(layer_cfg)
    for i, (apply_relu, agg_first) in enumerate(layer_cfg):
        w = wb_refs[2 * i][...]             # bf16 [F_in_pad, F_out_pad]
        b = wb_refs[2 * i + 1][...]         # f32  [1,        F_out_pad]
        # Â is re-read from its VMEM ref at each use (vld slot is cheap)
        # instead of being hoisted above the unrolled layer loop, so it is not
        # kept live across all 2L matmuls.
        if agg_first:
            # (Â @ H) @ W — aggregation runs on the narrower F_in width.
            ah = jnp.dot(adj_ref[...], h, preferred_element_type=jnp.float32)
            z = jnp.dot(ah.astype(jnp.bfloat16), w,
                        preferred_element_type=jnp.float32)
        else:
            # Â @ (H @ W) — aggregation runs on the narrower F_out width.
            hw = jnp.dot(h, w, preferred_element_type=jnp.float32)
            z = jnp.dot(adj_ref[...], hw.astype(jnp.bfloat16),
                        preferred_element_type=jnp.float32)
        z = z + b                           # VPU bias add (f32)
        if apply_relu:
            z = jnp.maximum(z, 0.0)
        if i == n_layers - 1:
            # Lane-dense, unmasked bf16 store of the final (padded) layer.
            o_ref[...] = z.astype(o_ref.dtype)
        else:
            h = z.astype(jnp.bfloat16)
        # TODO(synk): nn.Dropout(0.5) after hidden convs (i != 0) is treated
        # as eval-mode identity (stochastic training dropout not reproduced).


# ----------------------------------------------------------------------------
# Wrapper: pad operands to lane-dense shapes and run one pallas_call.
# ----------------------------------------------------------------------------
def gcnnet_forward(params, x, adj):
    n, f0 = x.shape
    n_convs = len(params)
    n_classes = params[-1][0].shape[1]

    n_pad = _round_up(n, LANE)
    f0_pad = _round_up(f0, LANE)

    adj_p = jnp.zeros((n_pad, n_pad), jnp.bfloat16).at[:n, :n].set(
        adj.astype(jnp.bfloat16))
    x_p = jnp.zeros((n_pad, f0_pad), jnp.bfloat16).at[:n, :f0].set(
        x.astype(jnp.bfloat16))

    operands = [adj_p, x_p]
    layer_cfg = []
    flops = 0
    max_f_pad = f0_pad
    f_in_pad = f0_pad
    for i, (w, b) in enumerate(params):
        is_last = i == n_convs - 1
        d_in, d_out = w.shape
        f_out_pad = _round_up(d_out, LANE)
        max_f_pad = max(max_f_pad, f_out_pad)

        w_p = jnp.zeros((f_in_pad, f_out_pad), jnp.bfloat16)
        w_p = w_p.at[:d_in, :d_out].set(w.astype(jnp.bfloat16))
        b_p = jnp.zeros((1, f_out_pad), jnp.float32)
        b_p = b_p.at[0, :d_out].set(b.astype(jnp.float32))
        operands.append(w_p)
        operands.append(b_p)

        # NOTE: ordering heuristic operates on PADDED (physical) dims — the
        # shapes the MXU actually sees.
        agg_first = f_in_pad < f_out_pad
        layer_cfg.append((not is_last, agg_first))

        f_narrow = f_in_pad if agg_first else f_out_pad
        flops += 2 * n_pad * n_pad * f_narrow          # aggregation matmul
        flops += 2 * n_pad * f_in_pad * f_out_pad      # feature transform
        f_in_pad = f_out_pad
    f_last_pad = f_in_pad

    kernel = functools.partial(fused_gcn_kernel, layer_cfg=tuple(layer_cfg))

    operand_bytes = sum(int(op.size) * op.dtype.itemsize for op in operands)
    out_bytes = n_pad * f_last_pad * 2  # bf16 output
    # Actual resident need (operands + output + f32 intermediates) with a 4x
    # headroom factor; never request more than half the physical VMEM so the
    # compiler keeps room for its own scratch (matters on v7x's 64 MiB).
    need = operand_bytes + out_bytes + 6 * n_pad * max_f_pad * 4
    vmem_limit = int(min(max(4 * need, 8 << 20), _physical_vmem_bytes() // 2))

    cost = pl.CostEstimate(
        flops=int(flops),
        transcendentals=0,
        bytes_accessed=int(operand_bytes + out_bytes),
    )

    out_padded = pl.pallas_call(
        kernel,
        out_shape=jax.ShapeDtypeStruct((n_pad, f_last_pad), jnp.bfloat16),
        # No grid: one invocation, whole-array VMEM refs, no double-buffering.
        compiler_params=pltpu.CompilerParams(vmem_limit_bytes=vmem_limit),
        cost_estimate=cost,
    )(*operands)

    return out_padded[:n, :n_classes].astype(jnp.float32)


# ----------------------------------------------------------------------------
# Glue: dense symmetric-normalized adjacency  Â = D^-1/2 (A + I_missing) D^-1/2
# (add_remaining_self_loops semantics, matching torch_geometric's gcn_norm)
# ----------------------------------------------------------------------------
def normalized_adjacency(edge_index, n_nodes):
    src = edge_index[0]
    tgt = edge_index[1]
    adj = jnp.zeros((n_nodes, n_nodes), jnp.float32).at[tgt, src].add(1.0)
    diag = jnp.diagonal(adj)
    adj = adj + jnp.diag(jnp.where(diag > 0, 0.0, 1.0))  # remaining self loops
    deg = adj.sum(axis=1)
    dinv = jnp.where(deg > 0, 1.0 / jnp.sqrt(deg), 0.0)
    return dinv[:, None] * adj * dinv[None, :]


# ----------------------------------------------------------------------------
# Parameter construction mirroring GCNNet.__init__ (glorot weights, zero bias)
# ----------------------------------------------------------------------------
def make_gcnnet_params(key, in_channels, hidden_channels, n_layers, n_classes):
    hidden_dims = [hidden_channels, hidden_channels]
    for _ in range(n_layers - 2):
        hidden_dims.append(hidden_channels * 2)

    dims = []
    for i in range(n_layers - 1):
        d_in = in_channels if i == 0 else hidden_dims[i - 1]
        dims.append((d_in, hidden_dims[i]))
    dims.append((hidden_dims[-1], n_classes))  # final conv

    params = []
    for (d_in, d_out) in dims:
        key, sub = jax.random.split(key)
        limit = jnp.sqrt(6.0 / (d_in + d_out))  # glorot uniform
        w = jax.random.uniform(sub, (d_in, d_out), jnp.float32, -limit, limit)
        b = jnp.zeros((d_out,), jnp.float32)
        params.append((w, b))
    return params


# Pure-JAX reference (f32) for a sanity check against the fused kernel.
def gcnnet_reference(params, x, adj):
    n_convs = len(params)
    h = x
    for i, (w, b) in enumerate(params):
        h = adj @ (h @ w) + b[None, :]
        if i != n_convs - 1:
            h = jnp.maximum(h, 0.0)
    return h


# ----------------------------------------------------------------------------
if __name__ == "__main__":
    key = jax.random.PRNGKey(0)

    # small, consistent shapes
    n_nodes = 64
    n_edges = 256
    in_channels = 16
    hidden_channels = 32
    n_layers = 4          # -> convs: 16->32, 32->32, 32->64, 64->n_classes
    n_classes = 8

    k_x, k_src, k_tgt, k_params = jax.random.split(key, 4)

    x = jax.random.normal(k_x, (n_nodes, in_channels), jnp.float32)
    edge_index = jnp.stack(
        [
            jax.random.randint(k_src, (n_edges,), 0, n_nodes, jnp.int32),
            jax.random.randint(k_tgt, (n_edges,), 0, n_nodes, jnp.int32),
        ],
        axis=0,
    )

    adj = normalized_adjacency(edge_index, n_nodes)
    params = make_gcnnet_params(
        k_params, in_channels, hidden_channels, n_layers, n_classes
    )

    out = gcnnet_forward(params, x, adj)
    out = jax.block_until_ready(out)

    assert out.shape == (n_nodes, n_classes), out.shape
    assert bool(jnp.all(jnp.isfinite(out)))

    # bf16-MXU kernel vs f32 reference: generous tolerance.
    ref = gcnnet_reference(params, x, adj)
    max_err = float(jnp.max(jnp.abs(out - ref)))
    assert bool(jnp.allclose(out, ref, atol=1e-1, rtol=1e-1)), max_err

    print("KERNEL_OK")
</pallas_src>

<mosaic_0001>
module attributes {stable_mosaic.version = 11 : i64} {
  func.func @fused_gcn_kernel(%arg0: memref<128x128xbf16, #tpu.memory_space<vmem>>, %arg1: memref<128x128xbf16, #tpu.memory_space<vmem>>, %arg2: memref<128x128xbf16, #tpu.memory_space<vmem>>, %arg3: memref<1x128xf32, #tpu.memory_space<vmem>>, %arg4: memref<128x128xbf16, #tpu.memory_space<vmem>>, %arg5: memref<1x128xf32, #tpu.memory_space<vmem>>, %arg6: memref<128x128xbf16, #tpu.memory_space<vmem>>, %arg7: memref<1x128xf32, #tpu.memory_space<vmem>>, %arg8: memref<128x128xbf16, #tpu.memory_space<vmem>>, %arg9: memref<1x128xf32, #tpu.memory_space<vmem>>, %arg10: memref<128x128xbf16, #tpu.memory_space<vmem>>) attributes {dimension_semantics = [], scalar_prefetch = 0 : i64, scratch_operands = 0 : i64, tpu.core_type = #tpu.core_type<tc>} {
    %c0 = arith.constant 0 : index
    %c0_0 = arith.constant 0 : index
    %0 = vector.load %arg1[%c0, %c0_0] : memref<128x128xbf16, #tpu.memory_space<vmem>>, vector<128x128xbf16>
    %c0_1 = arith.constant 0 : index
    %c0_2 = arith.constant 0 : index
    %1 = vector.load %arg2[%c0_1, %c0_2] : memref<128x128xbf16, #tpu.memory_space<vmem>>, vector<128x128xbf16>
    %c0_3 = arith.constant 0 : index
    %c0_4 = arith.constant 0 : index
    %2 = vector.load %arg3[%c0_3, %c0_4] : memref<1x128xf32, #tpu.memory_space<vmem>>, vector<1x128xf32>
    %cst = arith.constant dense<0.000000e+00> : vector<128x128xf32>
    %3 = tpu.matmul %0, %1, %cst {dimension_numbers = #tpu.dot_dimension_numbers<[1], [0], [0], [1], [0, 0, 1, 1], [], []>} : vector<128x128xbf16>, vector<128x128xbf16>, vector<128x128xf32> -> vector<128x128xf32>
    %c0_5 = arith.constant 0 : index
    %c0_6 = arith.constant 0 : index
    %4 = vector.load %arg0[%c0_5, %c0_6] : memref<128x128xbf16, #tpu.memory_space<vmem>>, vector<128x128xbf16>
    %5 = arith.truncf %3 : vector<128x128xf32> to vector<128x128xbf16>
    %cst_7 = arith.constant dense<0.000000e+00> : vector<128x128xf32>
    %6 = tpu.matmul %4, %5, %cst_7 {dimension_numbers = #tpu.dot_dimension_numbers<[1], [0], [0], [1], [0, 0, 1, 1], [], []>} : vector<128x128xbf16>, vector<128x128xbf16>, vector<128x128xf32> -> vector<128x128xf32>
    %7 = vector.broadcast %2 : vector<1x128xf32> to vector<128x128xf32>
    %8 = arith.addf %6, %7 : vector<128x128xf32>
    %cst_8 = arith.constant 0.000000e+00 : f32
    %9 = vector.broadcast %cst_8 : f32 to vector<128x128xf32>
    %10 = arith.maximumf %8, %9 : vector<128x128xf32>
    %11 = arith.truncf %10 : vector<128x128xf32> to vector<128x128xbf16>
    %c0_9 = arith.constant 0 : index
    %c0_10 = arith.constant 0 : index
    %12 = vector.load %arg4[%c0_9, %c0_10] : memref<128x128xbf16, #tpu.memory_space<vmem>>, vector<128x128xbf16>
    %c0_11 = arith.constant 0 : index
    %c0_12 = arith.constant 0 : index
    %13 = vector.load %arg5[%c0_11, %c0_12] : memref<1x128xf32, #tpu.memory_space<vmem>>, vector<1x128xf32>
    %cst_13 = arith.constant dense<0.000000e+00> : vector<128x128xf32>
    %14 = tpu.matmul %11, %12, %cst_13 {dimension_numbers = #tpu.dot_dimension_numbers<[1], [0], [0], [1], [0, 0, 1, 1], [], []>} : vector<128x128xbf16>, vector<128x128xbf16>, vector<128x128xf32> -> vector<128x128xf32>
    %c0_14 = arith.constant 0 : index
    %c0_15 = arith.constant 0 : index
    %15 = vector.load %arg0[%c0_14, %c0_15] : memref<128x128xbf16, #tpu.memory_space<vmem>>, vector<128x128xbf16>
    %16 = arith.truncf %14 : vector<128x128xf32> to vector<128x128xbf16>
    %cst_16 = arith.constant dense<0.000000e+00> : vector<128x128xf32>
    %17 = tpu.matmul %15, %16, %cst_16 {dimension_numbers = #tpu.dot_dimension_numbers<[1], [0], [0], [1], [0, 0, 1, 1], [], []>} : vector<128x128xbf16>, vector<128x128xbf16>, vector<128x128xf32> -> vector<128x128xf32>
    %18 = vector.broadcast %13 : vector<1x128xf32> to vector<128x128xf32>
    %19 = arith.addf %17, %18 : vector<128x128xf32>
    %cst_17 = arith.constant 0.000000e+00 : f32
    %20 = vector.broadcast %cst_17 : f32 to vector<128x128xf32>
    %21 = arith.maximumf %19, %20 : vector<128x128xf32>
    %22 = arith.truncf %21 : vector<128x128xf32> to vector<128x128xbf16>
    %c0_18 = arith.constant 0 : index
    %c0_19 = arith.constant 0 : index
    %23 = vector.load %arg6[%c0_18, %c0_19] : memref<128x128xbf16, #tpu.memory_space<vmem>>, vector<128x128xbf16>
    %c0_20 = arith.constant 0 : index
    %c0_21 = arith.constant 0 : index
    %24 = vector.load %arg7[%c0_20, %c0_21] : memref<1x128xf32, #tpu.memory_space<vmem>>, vector<1x128xf32>
    %cst_22 = arith.constant dense<0.000000e+00> : vector<128x128xf32>
    %25 = tpu.matmul %22, %23, %cst_22 {dimension_numbers = #tpu.dot_dimension_numbers<[1], [0], [0], [1], [0, 0, 1, 1], [], []>} : vector<128x128xbf16>, vector<128x128xbf16>, vector<128x128xf32> -> vector<128x128xf32>
    %c0_23 = arith.constant 0 : index
    %c0_24 = arith.constant 0 : index
    %26 = vector.load %arg0[%c0_23, %c0_24] : memref<128x128xbf16, #tpu.memory_space<vmem>>, vector<128x128xbf16>
    %27 = arith.truncf %25 : vector<128x128xf32> to vector<128x128xbf16>
    %cst_25 = arith.constant dense<0.000000e+00> : vector<128x128xf32>
    %28 = tpu.matmul %26, %27, %cst_25 {dimension_numbers = #tpu.dot_dimension_numbers<[1], [0], [0], [1], [0, 0, 1, 1], [], []>} : vector<128x128xbf16>, vector<128x128xbf16>, vector<128x128xf32> -> vector<128x128xf32>
    %29 = vector.broadcast %24 : vector<1x128xf32> to vector<128x128xf32>
    %30 = arith.addf %28, %29 : vector<128x128xf32>
    %cst_26 = arith.constant 0.000000e+00 : f32
    %31 = vector.broadcast %cst_26 : f32 to vector<128x128xf32>
    %32 = arith.maximumf %30, %31 : vector<128x128xf32>
    %33 = arith.truncf %32 : vector<128x128xf32> to vector<128x128xbf16>
    %c0_27 = arith.constant 0 : index
    %c0_28 = arith.constant 0 : index
    %34 = vector.load %arg8[%c0_27, %c0_28] : memref<128x128xbf16, #tpu.memory_space<vmem>>, vector<128x128xbf16>
    %c0_29 = arith.constant 0 : index
    %c0_30 = arith.constant 0 : index
    %35 = vector.load %arg9[%c0_29, %c0_30] : memref<1x128xf32, #tpu.memory_space<vmem>>, vector<1x128xf32>
    %cst_31 = arith.constant dense<0.000000e+00> : vector<128x128xf32>
    %36 = tpu.matmul %33, %34, %cst_31 {dimension_numbers = #tpu.dot_dimension_numbers<[1], [0], [0], [1], [0, 0, 1, 1], [], []>} : vector<128x128xbf16>, vector<128x128xbf16>, vector<128x128xf32> -> vector<128x128xf32>
    %c0_32 = arith.constant 0 : index
    %c0_33 = arith.constant 0 : index
    %37 = vector.load %arg0[%c0_32, %c0_33] : memref<128x128xbf16, #tpu.memory_space<vmem>>, vector<128x128xbf16>
    %38 = arith.truncf %36 : vector<128x128xf32> to vector<128x128xbf16>
    %cst_34 = arith.constant dense<0.000000e+00> : vector<128x128xf32>
    %39 = tpu.matmul %37, %38, %cst_34 {dimension_numbers = #tpu.dot_dimension_numbers<[1], [0], [0], [1], [0, 0, 1, 1], [], []>} : vector<128x128xbf16>, vector<128x128xbf16>, vector<128x128xf32> -> vector<128x128xf32>
    %40 = vector.broadcast %35 : vector<1x128xf32> to vector<128x128xf32>
    %41 = arith.addf %39, %40 : vector<128x128xf32>
    %42 = arith.truncf %41 : vector<128x128xf32> to vector<128x128xbf16>
    %c0_35 = arith.constant 0 : index
    %c0_36 = arith.constant 0 : index
    %43 = vector.load %arg10[%c0_35, %c0_36] : memref<128x128xbf16, #tpu.memory_space<vmem>>, vector<128x128xbf16>
    tpu.vector_store %arg10[%c0_35, %c0_36], %42 {strides = array<i32>} : memref<128x128xbf16, #tpu.memory_space<vmem>>, vector<128x128xbf16>,
    return
  }
}

</mosaic_0001>

<bundles_post_ra>
// kernel: tpu_custom_call.1
= control target key start
LH: loop header
LB: loop body
LE: loop exit
PB: predicated region body
PF: predicated region fallthrough
CT: control target
= control target key end

     0   :  { %15 = vsyncpa [#allocation3], 0  ;;  %s2399_s0 = inlined_call_operand.hbm [shape: bf16[128,128], index: 0, kind: input, shape index: {}]   ;;  %s2400_s1 = inlined_call_operand.hbm [shape: bf16[128,128], index: 1, kind: input, shape index: {}]   ;;  %s2401_s2 = inlined_call_operand.hbm [shape: bf16[128,128], index: 2, kind: input, shape index: {}]   ;;  %s2402_s3 = inlined_call_operand.vmem [shape: f32[1,128], index: 3, kind: input, shape index: {}]   ;;  %s2403_s4 = inlined_call_operand.hbm [shape: bf16[128,128], index: 4, kind: input, shape index: {}]   ;;  %s2404_s5 = inlined_call_operand.vmem [shape: f32[1,128], index: 5, kind: input, shape index: {}]   ;;  %s2405_s6 = inlined_call_operand.hbm [shape: bf16[128,128], index: 6, kind: input, shape index: {}]   ;;  %s2406_s7 = inlined_call_operand.vmem [shape: f32[1,128], index: 7, kind: input, shape index: {}]   ;;  %s2407_s8 = inlined_call_operand.hbm [shape: bf16[128,128], index: 8, kind: input, shape index: {}]   ;;  %s2408_s9 = inlined_call_operand.vmem [shape: f32[1,128], index: 9, kind: input, shape index: {}]   ;;  %s2409_s10 = inlined_call_operand.hbm [shape: bf16[128,128], index: 10, kind: output, shape index: {}]  }
   0x1   :  { %16 = vsyncpa [#allocation6], 0 }
   0x2   :  { %17 = vsyncpa [#allocation9], 0 }
   0x3   :  { %18 = vsyncpa [#allocation12], 0 }
   0x4   :  { %19 = vsyncpa [#allocation4], 0  ;;  %s2233_s13 = smov [#allocation5]   ;;  %s2234_s15 = smov [#allocation8]  }
   0x5   :  { %s37_s14 = sshll.u32 %s2233_s13, 4  ;;  %s63_s16 = sshll.u32 %s2234_s15, 4  ;;  %s38_s14 = int_to_ptr.vmem [resolvable:$true] %s37_s14  ;;  %s64_s16 = int_to_ptr.vmem [resolvable:$true] %s63_s16 }
   0x6   :  { %s2091_s17 = scalar_lea.vmem %s38_s14, 1024  ;;  %p2096_p1 = scmp.lt.s32.totalorder %s38_s14, %s38_s14 }
   0x7   :  { %p2092_p0 = scmp.ne.s32.totalorder %s38_s14, %s2091_s17  ;;  %p2097_p2 = scmp.lt.s32.totalorder %s2091_s17, %s2091_s17 }
   0x9   :  { %p2098_p3 = por %p2097_p2, %p2096_p1 }
   0xb   :  { %p2099_p4 = pnand %p2098_p3, %p2092_p0 }
   0xd   :  { %2102 = shalt.err (!%p2099_p4)
}
   0xe   :  { %s2235_s18 = smov 64   ;;  %s2236_s19 = smov 4  }
   0xf   :  { %43 = dma.hbm_to_vmem [thread:$0]  %s2400_s1, 1024, %s38_s14, [#allocation6], %s2235_s18, %s2235_s18, %s2236_s19  }
  0x10   :  { %s2111_s22 = scalar_lea.vmem %s64_s16, 1024  ;;  %p2116_p6 = scmp.lt.s32.totalorder %s64_s16, %s64_s16 }
  0x11   :  { %p2112_p5 = scmp.ne.s32.totalorder %s64_s16, %s2111_s22  ;;  %p2117_p7 = scmp.lt.s32.totalorder %s2111_s22, %s2111_s22 }
  0x13   :  { %p2118_p8 = por %p2117_p7, %p2116_p6 }
  0x15   :  { %p2119_p9 = pnand %p2118_p8, %p2112_p5 }
  0x17   :  { %2122 = shalt.err (!%p2119_p9)
}
  0x18   :  { %69 = dma.hbm_to_vmem [thread:$0]  %s2403_s4, 1024, %s64_s16, [#allocation9], %s2235_s18, %s2235_s18, %s2236_s19  }
  0x19   :  { %s2237_s25 = smov [#allocation2]   ;;  %s2238_s27 = smov [#allocation7]  }
  0x1a   :  { %s25_s26 = sshll.u32 %s2237_s25, 4  ;;  %s49_s28 = sshll.u32 %s2238_s27, 4  ;;  %s26_s26 = int_to_ptr.vmem [resolvable:$true] %s25_s26  ;;  %s50_s28 = int_to_ptr.vmem [resolvable:$true] %s49_s28 }
  0x1b   :  { %s2131_s1 = scalar_lea.vmem %s26_s26, 1024  ;;  %p2136_p11 = scmp.lt.s32.totalorder %s26_s26, %s26_s26 }
  0x1c   :  { %p2132_p10 = scmp.ne.s32.totalorder %s26_s26, %s2131_s1  ;;  %p2137_p12 = scmp.lt.s32.totalorder %s2131_s1, %s2131_s1 }
  0x1e   :  { %p2138_p13 = por %p2137_p12, %p2136_p11 }
  0x20   :  { %p2139_p0 = pnand %p2138_p13, %p2132_p10 }
  0x22   :  { %2142 = shalt.err (!%p2139_p0)
}
  0x23   :  { %31 = dma.hbm_to_vmem [thread:$0]  %s2399_s0, 1024, %s26_s26, [#allocation3], %s2235_s18, %s2235_s18, %s2236_s19  }
  0x24   :  { %s2151_s4 = scalar_lea.vmem %s50_s28, 1024  ;;  %p2156_p2 = scmp.lt.s32.totalorder %s50_s28, %s50_s28 }
  0x25   :  { %p2152_p1 = scmp.ne.s32.totalorder %s50_s28, %s2151_s4  ;;  %p2157_p3 = scmp.lt.s32.totalorder %s2151_s4, %s2151_s4 }
  0x27   :  { %p2158_p4 = por %p2157_p3, %p2156_p2 }
  0x29   :  { %p2159_p5 = pnand %p2158_p4, %p2152_p1 }
  0x2b   :  { %2162 = shalt.err (!%p2159_p5)
}
  0x2c   :  { %55 = dma.hbm_to_vmem [thread:$0]  %s2401_s2, 1024, %s50_s28, [#allocation6], %s2235_s18, %s2235_s18, %s2236_s19  }
  0x2d   :  { %s2239_s13 = smov [#allocation10]   ;;  %s2240_s15 = smov [#allocation11]  }
  0x2e   :  { %s77_s14 = sshll.u32 %s2239_s13, 4  ;;  %s91_s16 = sshll.u32 %s2240_s15, 4  ;;  %s78_s14 = int_to_ptr.vmem [resolvable:$true] %s77_s14  ;;  %s92_s16 = int_to_ptr.vmem [resolvable:$true] %s91_s16 }
  0x2f   :  { %s2171_s0 = scalar_lea.vmem %s78_s14, 1024  ;;  %p2176_p7 = scmp.lt.s32.totalorder %s78_s14, %s78_s14 }
  0x30   :  { %p2172_p6 = scmp.ne.s32.totalorder %s78_s14, %s2171_s0  ;;  %p2177_p8 = scmp.lt.s32.totalorder %s2171_s0, %s2171_s0 }
  0x32   :  { %p2178_p9 = por %p2177_p8, %p2176_p7 }
  0x34   :  { %p2179_p10 = pnand %p2178_p9, %p2172_p6 }
  0x36   :  { %2182 = shalt.err (!%p2179_p10)
}
  0x37   :  { %83 = dma.hbm_to_vmem [thread:$0]  %s2405_s6, 1024, %s78_s14, [#allocation9], %s2235_s18, %s2235_s18, %s2236_s19  }
  0x38   :  { %s2191_s2 = scalar_lea.vmem %s92_s16, 1024  ;;  %p2196_p12 = scmp.lt.s32.totalorder %s92_s16, %s92_s16 }
  0x39   :  { %p2192_p11 = scmp.ne.s32.totalorder %s92_s16, %s2191_s2  ;;  %p2197_p13 = scmp.lt.s32.totalorder %s2191_s2, %s2191_s2 }
  0x3b   :  { %p2198_p0 = por %p2197_p13, %p2196_p12 }
  0x3d   :  { %p2199_p1 = pnand %p2198_p0, %p2192_p11 }
  0x3f   :  { %2202 = shalt.err (!%p2199_p1)
}
  0x40   :  { %97 = dma.hbm_to_vmem [thread:$0]  %s2407_s8, 1024, %s92_s16, [#allocation12], %s2235_s18, %s2235_s18, %s2236_s19  }
  0x41   :  { %2223 = dma.done.wait [#allocation3], 1024  }
  0x42   :  { %2224 = vsyncadd [#allocation3], 4294966272 }
  0x43   :  { %2225 = dma.done.wait [#allocation6], 2048  }
  0x44   :  { %2226 = vsyncadd [#allocation6], 4294965248 }
  0x45   :  { %2227 = dma.done.wait [#allocation9], 2048  }
  0x46   :  { %2228 = vsyncadd [#allocation9], 4294965248 }
  0x47   :  { %2229 = dma.done.wait [#allocation12], 1024  }
  0x48   :  { %2230 = vsyncadd [#allocation12], 4294966272  ;;  %v2035_v0 = vld [vmem:[#allocation7 + $0x38] sm:$0xff]   ;;  %v2036_v1 = vld [vmem:[#allocation7 + $0x30] sm:$0xff]  }
  0x49   :  { %1770 = vmatprep.subr.bf16.mxu0 %v2035_v0  ;;  %v2037_v2 = vld [vmem:[#allocation7 + $0x28] sm:$0xff]   ;;  %v2038_v3 = vld [vmem:[#allocation7 + $0x20] sm:$0xff]   ;;  %v2039_v5 = vld [vmem:[#allocation7 + $0x18] sm:$0xff]  }
  0x4a   :  { %1771 = vmatpush3.bf16.msra.mxu0 %v2035_v0  ;;  %v2043_v4 = vld [vmem:[#allocation5] sm:$0xff]   ;;  %v2040_v6 = vld [vmem:[#allocation7 + $0x10] sm:$0xff]   ;;  %v2041_v7 = vld [vmem:[#allocation7 + $0x8] sm:$0xff]  }
  0x4b   :  { %1772 = vmatprep.subr.bf16.mxu0 %v2036_v1  ;;  %1786 = vmatprep.mubr.bf16.mxu0 %v2043_v4  ;;  %v2042_v8 = vld [vmem:[#allocation7] sm:$0xff]   ;;  %v2044_v9 = vld [vmem:[#allocation5 + $0x8] sm:$0xff]   ;;  %v2045_v10 = vld [vmem:[#allocation5 + $0x10] sm:$0xff]  }
  0x4c   :  { %v2046_v11 = vld [vmem:[#allocation5 + $0x18] sm:$0xff]   ;;  %v2047_v12 = vld [vmem:[#allocation5 + $0x20] sm:$0xff]   ;;  %v2048_v13 = vld [vmem:[#allocation5 + $0x28] sm:$0xff]  }
  0x4d   :  { %v2049_v14 = vld [vmem:[#allocation5 + $0x30] sm:$0xff]   ;;  %v2050_v15 = vld [vmem:[#allocation5 + $0x38] sm:$0xff]   ;;  %v2333_v16 = vld [vmem:[#allocation2] sm:$0xff]  }
  0x4e   :  { %1773 = vmatpush3.bf16.msra.mxu0 %v2036_v1  ;;  %1818 = vmatprep.mubr.bf16.mxu1 %v2333_v16  ;;  %v2059_v17 = vld [vmem:[#allocation8 + $0x38] sm:$0xff]   ;;  %v2060_v18 = vld [vmem:[#allocation8 + $0x30] sm:$0xff]   ;;  %v2061_v19 = vld [vmem:[#allocation8 + $0x28] sm:$0xff]  }
  0x4f   :  { %1774 = vmatprep.subr.bf16.mxu0 %v2037_v2  ;;  %v2062_v20 = vld [vmem:[#allocation8 + $0x20] sm:$0xff]   ;;  %v2063_v21 = vld [vmem:[#allocation8 + $0x18] sm:$0xff]   ;;  %v2336_v46 = vld [vmem:[#allocation2 + $0x8] sm:$0xff]  }
  0x50   :  { %v2338_v47 = vld [vmem:[#allocation2 + $0x10] sm:$0xff]   ;;  %v2342_v48 = vld [vmem:[#allocation2 + $0x18] sm:$0xff]   ;;  %v2344_v49 = vld [vmem:[#allocation2 + $0x20] sm:$0xff]  }
  0x51   :  { %v2348_v50 = vld [vmem:[#allocation2 + $0x28] sm:$0xff]   ;;  %v2350_v51 = vld [vmem:[#allocation2 + $0x30] sm:$0xff]   ;;  %v2354_v52 = vld [vmem:[#allocation2 + $0x38] sm:$0xff]  }
  0x52   :  { %1775 = vmatpush3.bf16.msra.mxu0 %v2037_v2  ;;  %v2064_v53 = vld [vmem:[#allocation8 + $0x10] sm:$0xff]   ;;  %v2065_v54 = vld [vmem:[#allocation8 + $0x8] sm:$0xff]   ;;  %v2066_v55 = vld [vmem:[#allocation8] sm:$0xff]  }
  0x53   :  { %1776 = vmatprep.subr.bf16.mxu0 %v2038_v3  ;;  %v1527_v58 = vld [vmem:[%s2402_s3] ss:$0 sm:$0xff] }
  0x56   :  { %1777 = vmatpush3.bf16.msra.mxu0 %v2038_v3 }
  0x57   :  { %1778 = vmatprep.subr.bf16.mxu0 %v2039_v5 }
  0x5a   :  { %1779 = vmatpush3.bf16.msra.mxu0 %v2039_v5 }
  0x5b   :  { %1780 = vmatprep.subr.bf16.mxu0 %v2040_v6 }
  0x5e   :  { %1781 = vmatpush3.bf16.msra.mxu0 %v2040_v6 }
  0x5f   :  { %1782 = vmatprep.subr.bf16.mxu0 %v2041_v7 }
  0x62   :  { %1783 = vmatpush3.bf16.msra.mxu0 %v2041_v7 }
  0x63   :  { %1784 = vmatprep.subr.bf16.mxu0 %v2042_v8 }
  0x66   :  { %1785 = vmatpush3.bf16.msra.mxu0 %v2042_v8 }
  0x67   :  { %1834 = vmatprep.subr.bf16.mxu0 %v2059_v17 }
  0x69   :  { %1787 = vmatmul.mubr.bf16.vlgmr.msra.gmra.mxu0 %v2044_v9 }
  0x6a   :  { %1790 = vmatprep.mubr.bf16.mxu0 %v2045_v10  ;;  %1835 = vmatpush3.bf16.msra.mxu0 %v2059_v17 }
  0x6b   :  { %1836 = vmatprep.subr.bf16.mxu0 %v2060_v18 }
  0x6e   :  { %1837 = vmatpush3.bf16.msra.mxu0 %v2060_v18 }
  0x6f   :  { %1838 = vmatprep.subr.bf16.mxu0 %v2061_v19 }
  0x71   :  { %1791 = vmatmul.mubr.bf16.gmra.mxu0 %v2046_v11 }
  0x72   :  { %1794 = vmatprep.mubr.bf16.mxu0 %v2047_v12  ;;  %1839 = vmatpush3.bf16.msra.mxu0 %v2061_v19 }
  0x73   :  { %1840 = vmatprep.subr.bf16.mxu0 %v2062_v20 }
  0x76   :  { %1841 = vmatpush3.bf16.msra.mxu0 %v2062_v20 }
  0x77   :  { %1842 = vmatprep.subr.bf16.mxu0 %v2063_v21 }
  0x79   :  { %1795 = vmatmul.mubr.bf16.gmra.mxu0 %v2048_v13 }
  0x7a   :  { %1798 = vmatprep.mubr.bf16.mxu0 %v2049_v14  ;;  %1843 = vmatpush3.bf16.msra.mxu0 %v2063_v21 }
  0x7b   :  { %1844 = vmatprep.subr.bf16.mxu0 %v2064_v53 }
  0x7e   :  { %1845 = vmatpush3.bf16.msra.mxu0 %v2064_v53 }
  0x7f   :  { %1846 = vmatprep.subr.bf16.mxu0 %v2065_v54 }
  0x81   :  { %1799 = vmatmul.mubr.bf16.gmra.mxu0 %v2050_v15 }
  0x82   :  { %1847 = vmatpush3.bf16.msra.mxu0 %v2065_v54 }
  0x83   :  { %1848 = vmatprep.subr.bf16.mxu0 %v2066_v55 }
  0x86   :  { %1849 = vmatpush3.bf16.msra.mxu0 %v2066_v55 }
 0x129   :  { %v1788_v22 = vpop.f32.mrf.mxu0 }
 0x12b   :  { %v282_v23 = vpop.f32.mrf.mxu0 }
 0x12d   :  { %v1789_v24 = vpop.f32.mrf.mxu0 }
 0x12e   :  { %v362_v44 = vpack.c.bf16 %v1789_v24, %v1788_v22 }
 0x12f   :  { %v285_v25 = vpop.f32.mrf.mxu0 }
 0x130   :  { %v361_v45 = vpack.c.bf16 %v285_v25, %v282_v23 }
 0x131   :  { %v1792_v26 = vpop.f32.mrf.mxu0 }
 0x133   :  { %v298_v27 = vpop.f32.mrf.mxu0 }
 0x135   :  { %v1793_v28 = vpop.f32.mrf.mxu0 }
 0x136   :  { %v364_v42 = vpack.c.bf16 %v1793_v28, %v1792_v26 }
 0x137   :  { %v301_v29 = vpop.f32.mrf.mxu0 }
 0x138   :  { %v363_v43 = vpack.c.bf16 %v301_v29, %v298_v27 }
 0x139   :  { %v1796_v30 = vpop.f32.mrf.mxu0 }
 0x13b   :  { %v314_v31 = vpop.f32.mrf.mxu0 }
 0x13d   :  { %v1797_v32 = vpop.f32.mrf.mxu0 }
 0x13e   :  { %v366_v40 = vpack.c.bf16 %v1797_v32, %v1796_v30 }
 0x13f   :  { %v317_v33 = vpop.f32.mrf.mxu0 }
 0x140   :  { %v365_v41 = vpack.c.bf16 %v317_v33, %v314_v31 }
 0x141   :  { %v1800_v34 = vpop.f32.mrf.mxu0 }
 0x143   :  { %v330_v35 = vpop.f32.mrf.mxu0 }
 0x145   :  { %v1801_v36 = vpop.f32.mrf.mxu0 }
 0x146   :  { %v368_v37 = vpack.c.bf16 %v1801_v36, %v1800_v34 }
 0x147   :  { %v333_v38 = vpop.f32.mrf.mxu0 }
 0x148   :  { %v367_v39 = vpack.c.bf16 %v333_v38, %v330_v35  ;;  %1802 = vmatprep.subr.bf16.mxu1 %v368_v37 }
 0x149   :  { %1803 = vmatpush3.bf16.msra.mxu1 %v368_v37 }
 0x14a   :  { %1804 = vmatprep.subr.bf16.mxu1 %v367_v39 }
 0x14d   :  { %1805 = vmatpush3.bf16.msra.mxu1 %v367_v39 }
 0x14e   :  { %1806 = vmatprep.subr.bf16.mxu1 %v366_v40 }
 0x151   :  { %1807 = vmatpush3.bf16.msra.mxu1 %v366_v40 }
 0x152   :  { %1808 = vmatprep.subr.bf16.mxu1 %v365_v41 }
 0x155   :  { %1809 = vmatpush3.bf16.msra.mxu1 %v365_v41 }
 0x156   :  { %1810 = vmatprep.subr.bf16.mxu1 %v364_v42 }
 0x159   :  { %1811 = vmatpush3.bf16.msra.mxu1 %v364_v42 }
 0x15a   :  { %1812 = vmatprep.subr.bf16.mxu1 %v363_v43 }
 0x15d   :  { %1813 = vmatpush3.bf16.msra.mxu1 %v363_v43 }
 0x15e   :  { %1814 = vmatprep.subr.bf16.mxu1 %v362_v44 }
 0x161   :  { %1815 = vmatpush3.bf16.msra.mxu1 %v362_v44 }
 0x162   :  { %1816 = vmatprep.subr.bf16.mxu1 %v361_v45 }
 0x165   :  { %1817 = vmatpush3.bf16.msra.mxu1 %v361_v45 }
 0x168   :  { %1819 = vmatmul.mubr.bf16.vlgmr.msra.gmra.mxu1 %v2336_v46 }
 0x169   :  { %1822 = vmatprep.mubr.bf16.mxu1 %v2338_v47 }
 0x170   :  { %1823 = vmatmul.mubr.bf16.gmra.mxu1 %v2342_v48 }
 0x171   :  { %1826 = vmatprep.mubr.bf16.mxu1 %v2344_v49 }
 0x178   :  { %1827 = vmatmul.mubr.bf16.gmra.mxu1 %v2348_v50 }
 0x179   :  { %1830 = vmatprep.mubr.bf16.mxu1 %v2350_v51 }
 0x180   :  { %1831 = vmatmul.mubr.bf16.gmra.mxu1 %v2354_v52 }
 0x181   :  { %1882 = vmatprep.mubr.bf16.mxu1 %v2333_v16 }
 0x228   :  { %v1820_v56 = vpop.f32.mrf.mxu1 }
 0x229   :  { %v466_v62 = vadd.f32 %v1820_v56, %v1527_v58 }
 0x22a   :  { %v457_v57 = vpop.f32.mrf.mxu1 }
 0x22b   :  { %v458_v60 = vadd.f32 %v1527_v58, %v457_v57  ;;  %v522_v5 = vmax.f32 %v466_v62, 0.0  ;;  %v2067_v57 = vld [vmem:[#allocation10 + $0x38] sm:$0xff]  }
 0x22c   :  { %v1821_v59 = vpop.f32.mrf.mxu1  ;;  %1898 = vmatprep.subr.bf16.mxu0 %v2067_v57 }
 0x22d   :  { %v469_v61 = vadd.f32 %v1821_v59, %v1527_v58  ;;  %v520_v3 = vmax.f32 %v458_v60, 0.0  ;;  %v2068_v59 = vld [vmem:[#allocation10 + $0x30] sm:$0xff]   ;;  %v2069_v60 = vld [vmem:[#allocation10 + $0x28] sm:$0xff]  }
 0x22e   :  { %v460_v63 = vpop.f32.mrf.mxu1 }
 0x22f   :  { %v461_v0 = vadd.f32 %v1527_v58, %v460_v63  ;;  %v523_v1 = vmax.f32 %v469_v61, 0.0  ;;  %v2070_v61 = vld [vmem:[#allocation10 + $0x20] sm:$0xff]  }
 0x230   :  { %v1824_v2 = vpop.f32.mrf.mxu1 }
 0x231   :  { %v521_v4 = vmax.f32 %v461_v0, 0.0  ;;  %v537_v8 = vpack.c.bf16 %v523_v1, %v522_v5  ;;  %v482_v12 = vadd.f32 %v1824_v2, %v1527_v58 }
 0x232   :  { %v473_v6 = vpop.f32.mrf.mxu1 }
 0x233   :  { %v536_v7 = vpack.c.bf16 %v521_v4, %v520_v3  ;;  %v474_v10 = vadd.f32 %v1527_v58, %v473_v6  ;;  %v526_v20 = vmax.f32 %v482_v12, 0.0 }
 0x234   :  { %v1825_v9 = vpop.f32.mrf.mxu1 }
 0x235   :  { %v485_v11 = vadd.f32 %v1825_v9, %v1527_v58  ;;  %1850 = vmatprep.mubr.bf16.mxu0 %v536_v7  ;;  %v524_v18 = vmax.f32 %v474_v10, 0.0 }
 0x236   :  { %v476_v13 = vpop.f32.mrf.mxu1  ;;  %1851 = vmatmul.mubr.bf16.vlgmr.msra.gmra.mxu0 %v537_v8 }
 0x237   :  { %v477_v14 = vadd.f32 %v1527_v58, %v476_v13  ;;  %v527_v15 = vmax.f32 %v485_v11, 0.0  ;;  %1899 = vmatpush3.bf16.msra.mxu0 %v2067_v57 }
 0x238   :  { %v1828_v17 = vpop.f32.mrf.mxu1  ;;  %1900 = vmatprep.subr.bf16.mxu0 %v2068_v59 }
 0x239   :  { %v525_v19 = vmax.f32 %v477_v14, 0.0  ;;  %v539_v23 = vpack.c.bf16 %v527_v15, %v526_v20  ;;  %v498_v27 = vadd.f32 %v1828_v17, %v1527_v58 }
 0x23a   :  { %v489_v21 = vpop.f32.mrf.mxu1 }
 0x23b   :  { %v538_v22 = vpack.c.bf16 %v525_v19, %v524_v18  ;;  %v490_v25 = vadd.f32 %v1527_v58, %v489_v21  ;;  %v530_v34 = vmax.f32 %v498_v27, 0.0  ;;  %1901 = vmatpush3.bf16.msra.mxu0 %v2068_v59 }
 0x23c   :  { %v1829_v24 = vpop.f32.mrf.mxu1  ;;  %1902 = vmatprep.subr.bf16.mxu0 %v2069_v60 }
 0x23d   :  { %v501_v26 = vadd.f32 %v1829_v24, %v1527_v58  ;;  %1854 = vmatprep.mubr.bf16.mxu0 %v538_v22  ;;  %v528_v32 = vmax.f32 %v490_v25, 0.0  ;;  %v2073_v24 = vld [vmem:[#allocation10 + $0x8] sm:$0xff]   ;;  %v2074_v25 = vld [vmem:[#allocation10] sm:$0xff]  }
 0x23e   :  { %v492_v28 = vpop.f32.mrf.mxu1  ;;  %1855 = vmatmul.mubr.bf16.gmra.mxu0 %v539_v23  ;;  %v2072_v23 = vld [vmem:[#allocation10 + $0x10] sm:$0xff]  }
 0x23f   :  { %v493_v29 = vadd.f32 %v1527_v58, %v492_v28  ;;  %v531_v30 = vmax.f32 %v501_v26, 0.0  ;;  %1903 = vmatpush3.bf16.msra.mxu0 %v2069_v60  ;;  %v1544_v28 = vld [vmem:[%s2404_s5] ss:$0 sm:$0xff] }
 0x240   :  { %v1832_v31 = vpop.f32.mrf.mxu1  ;;  %1904 = vmatprep.subr.bf16.mxu0 %v2070_v61 }
 0x241   :  { %v529_v33 = vmax.f32 %v493_v29, 0.0  ;;  %v541_v37 = vpack.c.bf16 %v531_v30, %v530_v34  ;;  %v514_v41 = vadd.f32 %v1832_v31, %v1527_v58 }
 0x242   :  { %v505_v35 = vpop.f32.mrf.mxu1 }
 0x243   :  { %v540_v36 = vpack.c.bf16 %v529_v33, %v528_v32  ;;  %v506_v39 = vadd.f32 %v1527_v58, %v505_v35  ;;  %v534_v54 = vmax.f32 %v514_v41, 0.0  ;;  %1905 = vmatpush3.bf16.msra.mxu0 %v2070_v61 }
 0x244   :  { %v1833_v38 = vpop.f32.mrf.mxu1 }
 0x245   :  { %v517_v40 = vadd.f32 %v1833_v38, %v1527_v58  ;;  %1858 = vmatprep.mubr.bf16.mxu0 %v540_v36  ;;  %v532_v45 = vmax.f32 %v506_v39, 0.0 }
 0x246   :  { %v508_v42 = vpop.f32.mrf.mxu1  ;;  %1859 = vmatmul.mubr.bf16.gmra.mxu0 %v541_v37 }
 0x247   :  { %v509_v43 = vadd.f32 %v1527_v58, %v508_v42  ;;  %v535_v44 = vmax.f32 %v517_v40, 0.0  ;;  %v2071_v58 = vld [vmem:[#allocation10 + $0x18] sm:$0xff]  }
 0x248   :  { %1906 = vmatprep.subr.bf16.mxu0 %v2071_v58 }
 0x249   :  { %v533_v53 = vmax.f32 %v509_v43, 0.0  ;;  %v543_v56 = vpack.c.bf16 %v535_v44, %v534_v54  ;;  %1907 = vmatpush3.bf16.msra.mxu0 %v2071_v58 }
 0x24a   :  { %1908 = vmatprep.subr.bf16.mxu0 %v2072_v23 }
 0x24b   :  { %v542_v55 = vpack.c.bf16 %v533_v53, %v532_v45 }
 0x24d   :  { %1862 = vmatprep.mubr.bf16.mxu0 %v542_v55  ;;  %1909 = vmatpush3.bf16.msra.mxu0 %v2072_v23 }
 0x24e   :  { %1863 = vmatmul.mubr.bf16.gmra.mxu0 %v543_v56  ;;  %1910 = vmatprep.subr.bf16.mxu0 %v2073_v24 }
 0x251   :  { %1911 = vmatpush3.bf16.msra.mxu0 %v2073_v24 }
 0x252   :  { %1912 = vmatprep.subr.bf16.mxu0 %v2074_v25 }
 0x255   :  { %1913 = vmatpush3.bf16.msra.mxu0 %v2074_v25 }
 0x2f6   :  { %v1852_v62 = vpop.f32.mrf.mxu0 }
 0x2f8   :  { %v643_v63 = vpop.f32.mrf.mxu0 }
 0x2fa   :  { %v1853_v0 = vpop.f32.mrf.mxu0 }
 0x2fb   :  { %v707_v21 = vpack.c.bf16 %v1853_v0, %v1852_v62 }
 0x2fc   :  { %v646_v1 = vpop.f32.mrf.mxu0 }
 0x2fd   :  { %v706_v22 = vpack.c.bf16 %v646_v1, %v643_v63 }
 0x2fe   :  { %v1856_v2 = vpop.f32.mrf.mxu0 }
 0x300   :  { %v659_v3 = vpop.f32.mrf.mxu0 }
 0x302   :  { %v1857_v4 = vpop.f32.mrf.mxu0 }
 0x303   :  { %v709_v19 = vpack.c.bf16 %v1857_v4, %v1856_v2 }
 0x304   :  { %v662_v5 = vpop.f32.mrf.mxu0 }
 0x305   :  { %v708_v20 = vpack.c.bf16 %v662_v5, %v659_v3 }
 0x306   :  { %v1860_v6 = vpop.f32.mrf.mxu0 }
 0x308   :  { %v675_v7 = vpop.f32.mrf.mxu0 }
 0x30a   :  { %v1861_v8 = vpop.f32.mrf.mxu0 }
 0x30b   :  { %v711_v17 = vpack.c.bf16 %v1861_v8, %v1860_v6 }
 0x30c   :  { %v678_v9 = vpop.f32.mrf.mxu0 }
 0x30d   :  { %v710_v18 = vpack.c.bf16 %v678_v9, %v675_v7 }
 0x30e   :  { %v1864_v10 = vpop.f32.mrf.mxu0 }
 0x310   :  { %v691_v11 = vpop.f32.mrf.mxu0 }
 0x312   :  { %v1865_v12 = vpop.f32.mrf.mxu0 }
 0x313   :  { %v713_v13 = vpack.c.bf16 %v1865_v12, %v1864_v10 }
 0x314   :  { %v694_v14 = vpop.f32.mrf.mxu0 }
 0x315   :  { %v712_v15 = vpack.c.bf16 %v694_v14, %v691_v11  ;;  %1866 = vmatprep.subr.bf16.mxu1 %v713_v13 }
 0x316   :  { %1867 = vmatpush3.bf16.msra.mxu1 %v713_v13 }
 0x317   :  { %1868 = vmatprep.subr.bf16.mxu1 %v712_v15 }
 0x31a   :  { %1869 = vmatpush3.bf16.msra.mxu1 %v712_v15 }
 0x31b   :  { %1870 = vmatprep.subr.bf16.mxu1 %v711_v17 }
 0x31e   :  { %1871 = vmatpush3.bf16.msra.mxu1 %v711_v17 }
 0x31f   :  { %1872 = vmatprep.subr.bf16.mxu1 %v710_v18 }
 0x322   :  { %1873 = vmatpush3.bf16.msra.mxu1 %v710_v18 }
 0x323   :  { %1874 = vmatprep.subr.bf16.mxu1 %v709_v19 }
 0x326   :  { %1875 = vmatpush3.bf16.msra.mxu1 %v709_v19 }
 0x327   :  { %1876 = vmatprep.subr.bf16.mxu1 %v708_v20 }
 0x32a   :  { %1877 = vmatpush3.bf16.msra.mxu1 %v708_v20 }
 0x32b   :  { %1878 = vmatprep.subr.bf16.mxu1 %v707_v21 }
 0x32e   :  { %1879 = vmatpush3.bf16.msra.mxu1 %v707_v21 }
 0x32f   :  { %1880 = vmatprep.subr.bf16.mxu1 %v706_v22 }
 0x332   :  { %1881 = vmatpush3.bf16.msra.mxu1 %v706_v22 }
 0x335   :  { %1883 = vmatmul.mubr.bf16.vlgmr.msra.gmra.mxu1 %v2336_v46 }
 0x336   :  { %1886 = vmatprep.mubr.bf16.mxu1 %v2338_v47 }
 0x33d   :  { %1887 = vmatmul.mubr.bf16.gmra.mxu1 %v2342_v48 }
 0x33e   :  { %1890 = vmatprep.mubr.bf16.mxu1 %v2344_v49 }
 0x345   :  { %1891 = vmatmul.mubr.bf16.gmra.mxu1 %v2348_v50 }
 0x346   :  { %1894 = vmatprep.mubr.bf16.mxu1 %v2350_v51 }
 0x34d   :  { %1895 = vmatmul.mubr.bf16.gmra.mxu1 %v2354_v52 }
 0x34e   :  { %1946 = vmatprep.mubr.bf16.mxu1 %v2333_v16 }
 0x3f5   :  { %v1884_v26 = vpop.f32.mrf.mxu1 }
 0x3f6   :  { %v763_v32 = vadd.f32 %v1884_v26, %v1544_v28 }
 0x3f7   :  { %v754_v27 = vpop.f32.mrf.mxu1 }
 0x3f8   :  { %v755_v30 = vadd.f32 %v1544_v28, %v754_v27  ;;  %v819_v39 = vmax.f32 %v763_v32, 0.0  ;;  %v2075_v27 = vld [vmem:[#allocation11 + $0x38] sm:$0xff]  }
 0x3f9   :  { %v1885_v29 = vpop.f32.mrf.mxu1  ;;  %1962 = vmatprep.subr.bf16.mxu0 %v2075_v27 }
 0x3fa   :  { %v766_v31 = vadd.f32 %v1885_v29, %v1544_v28  ;;  %v817_v37 = vmax.f32 %v755_v30, 0.0  ;;  %v2076_v29 = vld [vmem:[#allocation11 + $0x30] sm:$0xff]   ;;  %v2077_v30 = vld [vmem:[#allocation11 + $0x28] sm:$0xff]  }
 0x3fb   :  { %v757_v33 = vpop.f32.mrf.mxu1 }
 0x3fc   :  { %v758_v34 = vadd.f32 %v1544_v28, %v757_v33  ;;  %v820_v35 = vmax.f32 %v766_v31, 0.0  ;;  %v2078_v31 = vld [vmem:[#allocation11 + $0x20] sm:$0xff]  }
 0x3fd   :  { %v1888_v36 = vpop.f32.mrf.mxu1 }
 0x3fe   :  { %v818_v38 = vmax.f32 %v758_v34, 0.0  ;;  %v834_v42 = vpack.c.bf16 %v820_v35, %v819_v39  ;;  %v779_v53 = vadd.f32 %v1888_v36, %v1544_v28 }
 0x3ff   :  { %v770_v40 = vpop.f32.mrf.mxu1 }
 0x400   :  { %v833_v41 = vpack.c.bf16 %v818_v38, %v817_v37  ;;  %v771_v44 = vadd.f32 %v1544_v28, %v770_v40  ;;  %v823_v61 = vmax.f32 %v779_v53, 0.0 }
 0x401   :  { %v1889_v43 = vpop.f32.mrf.mxu1 }
 0x402   :  { %v782_v45 = vadd.f32 %v1889_v43, %v1544_v28  ;;  %1914 = vmatprep.mubr.bf16.mxu0 %v833_v41  ;;  %v821_v59 = vmax.f32 %v771_v44, 0.0 }
 0x403   :  { %v773_v54 = vpop.f32.mrf.mxu1  ;;  %1915 = vmatmul.mubr.bf16.vlgmr.msra.gmra.mxu0 %v834_v42 }
 0x404   :  { %v774_v55 = vadd.f32 %v1544_v28, %v773_v54  ;;  %v824_v56 = vmax.f32 %v782_v45, 0.0  ;;  %1963 = vmatpush3.bf16.msra.mxu0 %v2075_v27 }
 0x405   :  { %v1892_v57 = vpop.f32.mrf.mxu1  ;;  %1964 = vmatprep.subr.bf16.mxu0 %v2076_v29 }
 0x406   :  { %v822_v60 = vmax.f32 %v774_v55, 0.0  ;;  %v836_v63 = vpack.c.bf16 %v824_v56, %v823_v61  ;;  %v795_v3 = vadd.f32 %v1892_v57, %v1544_v28 }
 0x407   :  { %v786_v58 = vpop.f32.mrf.mxu1 }
 0x408   :  { %v835_v62 = vpack.c.bf16 %v822_v60, %v821_v59  ;;  %v787_v1 = vadd.f32 %v1544_v28, %v786_v58  ;;  %v827_v10 = vmax.f32 %v795_v3, 0.0  ;;  %1965 = vmatpush3.bf16.msra.mxu0 %v2076_v29 }
 0x409   :  { %v1893_v0 = vpop.f32.mrf.mxu1  ;;  %1966 = vmatprep.subr.bf16.mxu0 %v2077_v30 }
 0x40a   :  { %v798_v2 = vadd.f32 %v1893_v0, %v1544_v28  ;;  %1918 = vmatprep.mubr.bf16.mxu0 %v835_v62  ;;  %v825_v8 = vmax.f32 %v787_v1, 0.0  ;;  %v2081_v0 = vld [vmem:[#allocation11 + $0x8] sm:$0xff]   ;;  %v2082_v1 = vld [vmem:[#allocation11] sm:$0xff]  }
 0x40b   :  { %v789_v4 = vpop.f32.mrf.mxu1  ;;  %1919 = vmatmul.mubr.bf16.gmra.mxu0 %v836_v63  ;;  %v2080_v63 = vld [vmem:[#allocation11 + $0x10] sm:$0xff]  }
 0x40c   :  { %v790_v5 = vadd.f32 %v1544_v28, %v789_v4  ;;  %v828_v6 = vmax.f32 %v798_v2, 0.0  ;;  %1967 = vmatpush3.bf16.msra.mxu0 %v2077_v30  ;;  %v1553_v4 = vld [vmem:[%s2406_s7] ss:$0 sm:$0xff] }
 0x40d   :  { %v1896_v7 = vpop.f32.mrf.mxu1  ;;  %1968 = vmatprep.subr.bf16.mxu0 %v2078_v31 }
 0x40e   :  { %v826_v9 = vmax.f32 %v790_v5, 0.0  ;;  %v838_v13 = vpack.c.bf16 %v828_v6, %v827_v10  ;;  %v811_v18 = vadd.f32 %v1896_v7, %v1544_v28 }
 0x40f   :  { %v802_v11 = vpop.f32.mrf.mxu1 }
 0x410   :  { %v837_v12 = vpack.c.bf16 %v826_v9, %v825_v8  ;;  %v803_v15 = vadd.f32 %v1544_v28, %v802_v11  ;;  %v831_v24 = vmax.f32 %v811_v18, 0.0  ;;  %1969 = vmatpush3.bf16.msra.mxu0 %v2078_v31 }
 0x411   :  { %v1897_v14 = vpop.f32.mrf.mxu1 }
 0x412   :  { %v814_v17 = vadd.f32 %v1897_v14, %v1544_v28  ;;  %1922 = vmatprep.mubr.bf16.mxu0 %v837_v12  ;;  %v829_v22 = vmax.f32 %v803_v15, 0.0 }
 0x413   :  { %v805_v19 = vpop.f32.mrf.mxu1  ;;  %1923 = vmatmul.mubr.bf16.gmra.mxu0 %v838_v13 }
 0x414   :  { %v806_v20 = vadd.f32 %v1544_v28, %v805_v19  ;;  %v832_v21 = vmax.f32 %v814_v17, 0.0  ;;  %v2079_v28 = vld [vmem:[#allocation11 + $0x18] sm:$0xff]  }
 0x415   :  { %1970 = vmatprep.subr.bf16.mxu0 %v2079_v28 }
 0x416   :  { %v830_v23 = vmax.f32 %v806_v20, 0.0  ;;  %v840_v26 = vpack.c.bf16 %v832_v21, %v831_v24  ;;  %1971 = vmatpush3.bf16.msra.mxu0 %v2079_v28 }
 0x417   :  { %1972 = vmatprep.subr.bf16.mxu0 %v2080_v63 }
 0x418   :  { %v839_v25 = vpack.c.bf16 %v830_v23, %v829_v22 }
 0x41a   :  { %1926 = vmatprep.mubr.bf16.mxu0 %v839_v25  ;;  %1973 = vmatpush3.bf16.msra.mxu0 %v2080_v63 }
 0x41b   :  { %1927 = vmatmul.mubr.bf16.gmra.mxu0 %v840_v26  ;;  %1974 = vmatprep.subr.bf16.mxu0 %v2081_v0 }
 0x41e   :  { %1975 = vmatpush3.bf16.msra.mxu0 %v2081_v0 }
 0x41f   :  { %1976 = vmatprep.subr.bf16.mxu0 %v2082_v1 }
 0x422   :  { %1977 = vmatpush3.bf16.msra.mxu0 %v2082_v1 }
 0x4c3   :  { %v1916_v32 = vpop.f32.mrf.mxu0 }
 0x4c5   :  { %v940_v33 = vpop.f32.mrf.mxu0 }
 0x4c7   :  { %v1917_v34 = vpop.f32.mrf.mxu0 }
 0x4c8   :  { %v1004_v58 = vpack.c.bf16 %v1917_v34, %v1916_v32 }
 0x4c9   :  { %v943_v35 = vpop.f32.mrf.mxu0 }
 0x4ca   :  { %v1003_v62 = vpack.c.bf16 %v943_v35, %v940_v33 }
 0x4cb   :  { %v1920_v36 = vpop.f32.mrf.mxu0 }
 0x4cd   :  { %v956_v37 = vpop.f32.mrf.mxu0 }
 0x4cf   :  { %v1921_v38 = vpop.f32.mrf.mxu0 }
 0x4d0   :  { %v1006_v60 = vpack.c.bf16 %v1921_v38, %v1920_v36 }
 0x4d1   :  { %v959_v39 = vpop.f32.mrf.mxu0 }
 0x4d2   :  { %v1005_v61 = vpack.c.bf16 %v959_v39, %v956_v37 }
 0x4d3   :  { %v1924_v40 = vpop.f32.mrf.mxu0 }
 0x4d5   :  { %v972_v41 = vpop.f32.mrf.mxu0 }
 0x4d7   :  { %v1925_v42 = vpop.f32.mrf.mxu0 }
 0x4d8   :  { %v1008_v57 = vpack.c.bf16 %v1925_v42, %v1924_v40 }
 0x4d9   :  { %v975_v43 = vpop.f32.mrf.mxu0 }
 0x4da   :  { %v1007_v59 = vpack.c.bf16 %v975_v43, %v972_v41 }
 0x4db   :  { %v1928_v44 = vpop.f32.mrf.mxu0 }
 0x4dd   :  { %v988_v45 = vpop.f32.mrf.mxu0 }
 0x4df   :  { %v1929_v53 = vpop.f32.mrf.mxu0 }
 0x4e0   :  { %v1010_v54 = vpack.c.bf16 %v1929_v53, %v1928_v44 }
 0x4e1   :  { %v991_v55 = vpop.f32.mrf.mxu0 }
 0x4e2   :  { %v1009_v56 = vpack.c.bf16 %v991_v55, %v988_v45  ;;  %1930 = vmatprep.subr.bf16.mxu1 %v1010_v54 }
 0x4e3   :  { %1931 = vmatpush3.bf16.msra.mxu1 %v1010_v54 }
 0x4e4   :  { %1932 = vmatprep.subr.bf16.mxu1 %v1009_v56 }
 0x4e7   :  { %1933 = vmatpush3.bf16.msra.mxu1 %v1009_v56 }
 0x4e8   :  { %1934 = vmatprep.subr.bf16.mxu1 %v1008_v57 }
 0x4eb   :  { %1935 = vmatpush3.bf16.msra.mxu1 %v1008_v57 }
 0x4ec   :  { %1936 = vmatprep.subr.bf16.mxu1 %v1007_v59 }
 0x4ef   :  { %1937 = vmatpush3.bf16.msra.mxu1 %v1007_v59 }
 0x4f0   :  { %1938 = vmatprep.subr.bf16.mxu1 %v1006_v60 }
 0x4f3   :  { %1939 = vmatpush3.bf16.msra.mxu1 %v1006_v60 }
 0x4f4   :  { %1940 = vmatprep.subr.bf16.mxu1 %v1005_v61 }
 0x4f7   :  { %1941 = vmatpush3.bf16.msra.mxu1 %v1005_v61 }
 0x4f8   :  { %1942 = vmatprep.subr.bf16.mxu1 %v1004_v58 }
 0x4fb   :  { %1943 = vmatpush3.bf16.msra.mxu1 %v1004_v58 }
 0x4fc   :  { %1944 = vmatprep.subr.bf16.mxu1 %v1003_v62 }
 0x4ff   :  { %1945 = vmatpush3.bf16.msra.mxu1 %v1003_v62 }
 0x502   :  { %1947 = vmatmul.mubr.bf16.vlgmr.msra.gmra.mxu1 %v2336_v46 }
 0x503   :  { %1950 = vmatprep.mubr.bf16.mxu1 %v2338_v47 }
 0x50a   :  { %1951 = vmatmul.mubr.bf16.gmra.mxu1 %v2342_v48 }
 0x50b   :  { %1954 = vmatprep.mubr.bf16.mxu1 %v2344_v49 }
 0x512   :  { %1955 = vmatmul.mubr.bf16.gmra.mxu1 %v2348_v50 }
 0x513   :  { %1958 = vmatprep.mubr.bf16.mxu1 %v2350_v51 }
 0x51a   :  { %1959 = vmatmul.mubr.bf16.gmra.mxu1 %v2354_v52 }
 0x51b   :  { %2010 = vmatprep.mubr.bf16.mxu1 %v2333_v16 }
 0x5c2   :  { %v1948_v2 = vpop.f32.mrf.mxu1 }
 0x5c3   :  { %v1060_v8 = vadd.f32 %v1948_v2, %v1553_v4 }
 0x5c4   :  { %v1051_v3 = vpop.f32.mrf.mxu1 }
 0x5c5   :  { %v1052_v6 = vadd.f32 %v1553_v4, %v1051_v3  ;;  %v1116_v14 = vmax.f32 %v1060_v8, 0.0 }
 0x5c6   :  { %v1949_v5 = vpop.f32.mrf.mxu1 }
 0x5c7   :  { %v1063_v7 = vadd.f32 %v1949_v5, %v1553_v4  ;;  %v1114_v12 = vmax.f32 %v1052_v6, 0.0 }
 0x5c8   :  { %v1054_v16 = vpop.f32.mrf.mxu1 }
 0x5c9   :  { %v1055_v9 = vadd.f32 %v1553_v4, %v1054_v16  ;;  %v1117_v10 = vmax.f32 %v1063_v7, 0.0 }
 0x5ca   :  { %v1952_v11 = vpop.f32.mrf.mxu1 }
 0x5cb   :  { %v1115_v13 = vmax.f32 %v1055_v9, 0.0  ;;  %v1131_v18 = vpack.c.bf16 %v1117_v10, %v1116_v14  ;;  %v1076_v22 = vadd.f32 %v1952_v11, %v1553_v4 }
 0x5cc   :  { %v1067_v15 = vpop.f32.mrf.mxu1 }
 0x5cd   :  { %v1130_v17 = vpack.c.bf16 %v1115_v13, %v1114_v12  ;;  %v1068_v20 = vadd.f32 %v1553_v4, %v1067_v15  ;;  %v1120_v30 = vmax.f32 %v1076_v22, 0.0 }
 0x5ce   :  { %v1953_v19 = vpop.f32.mrf.mxu1 }
 0x5cf   :  { %v1079_v21 = vadd.f32 %v1953_v19, %v1553_v4  ;;  %1978 = vmatprep.mubr.bf16.mxu0 %v1130_v17  ;;  %v1118_v27 = vmax.f32 %v1068_v20, 0.0 }
 0x5d0   :  { %v1070_v23 = vpop.f32.mrf.mxu1  ;;  %1979 = vmatmul.mubr.bf16.vlgmr.msra.gmra.mxu0 %v1131_v18 }
 0x5d1   :  { %v1071_v24 = vadd.f32 %v1553_v4, %v1070_v23  ;;  %v1121_v25 = vmax.f32 %v1079_v21, 0.0 }
 0x5d2   :  { %v1956_v26 = vpop.f32.mrf.mxu1 }
 0x5d3   :  { %v1119_v29 = vmax.f32 %v1071_v24, 0.0  ;;  %v1133_v32 = vpack.c.bf16 %v1121_v25, %v1120_v30  ;;  %v1092_v36 = vadd.f32 %v1956_v26, %v1553_v4 }
 0x5d4   :  { %v1083_v31 = vpop.f32.mrf.mxu1 }
 0x5d5   :  { %v1132_v28 = vpack.c.bf16 %v1119_v29, %v1118_v27  ;;  %v1084_v34 = vadd.f32 %v1553_v4, %v1083_v31  ;;  %v1124_v43 = vmax.f32 %v1092_v36, 0.0  ;;  %v1562_v27 = vld [vmem:[%s2408_s9] ss:$0 sm:$0xff]  ;;  %s2241_s9 = smov [#allocation13]  }
 0x5d6   :  { %v1957_v33 = vpop.f32.mrf.mxu1  ;;  %s1496_s26 = sshll.u32 %s2241_s9, 4  ;;  %s1497_s26 = int_to_ptr.vmem [resolvable:$true] %s1496_s26 }
 0x5d7   :  { %v1095_v35 = vadd.f32 %v1957_v33, %v1553_v4  ;;  %1982 = vmatprep.mubr.bf16.mxu0 %v1132_v28  ;;  %v1122_v41 = vmax.f32 %v1084_v34, 0.0  ;;  %s2203_s27 = scalar_lea.vmem %s1497_s26, 1024  ;;  %p2208_p3 = scmp.lt.s32.totalorder %s1497_s26, %s1497_s26 }
 0x5d8   :  { %v1086_v37 = vpop.f32.mrf.mxu1  ;;  %1983 = vmatmul.mubr.bf16.gmra.mxu0 %v1133_v32  ;;  %p2204_p2 = scmp.ne.s32.totalorder %s1497_s26, %s2203_s27  ;;  %p2209_p4 = scmp.lt.s32.totalorder %s2203_s27, %s2203_s27 }
 0x5d9   :  { %v1087_v38 = vadd.f32 %v1553_v4, %v1086_v37  ;;  %v1125_v39 = vmax.f32 %v1095_v35, 0.0 }
 0x5da   :  { %v1960_v40 = vpop.f32.mrf.mxu1  ;;  %p2210_p5 = por %p2209_p4, %p2208_p3 }
 0x5db   :  { %v1123_v42 = vmax.f32 %v1087_v38, 0.0  ;;  %v1135_v53 = vpack.c.bf16 %v1125_v39, %v1124_v43  ;;  %v1108_v57 = vadd.f32 %v1960_v40, %v1553_v4 }
 0x5dc   :  { %v1099_v44 = vpop.f32.mrf.mxu1  ;;  %p2211_p6 = pnand %p2210_p5, %p2204_p2 }
 0x5dd   :  { %v1134_v45 = vpack.c.bf16 %v1123_v42, %v1122_v41  ;;  %v1100_v55 = vadd.f32 %v1553_v4, %v1099_v44  ;;  %v1128_v63 = vmax.f32 %v1108_v57, 0.0 }
 0x5de   :  { %v1961_v54 = vpop.f32.mrf.mxu1 }
 0x5df   :  { %v1111_v56 = vadd.f32 %v1961_v54, %v1553_v4  ;;  %1986 = vmatprep.mubr.bf16.mxu0 %v1134_v45  ;;  %v1126_v58 = vmax.f32 %v1100_v55, 0.0 }
 0x5e0   :  { %v1102_v59 = vpop.f32.mrf.mxu1  ;;  %1987 = vmatmul.mubr.bf16.gmra.mxu0 %v1135_v53 }
 0x5e1   :  { %v1103_v60 = vadd.f32 %v1553_v4, %v1102_v59  ;;  %v1129_v61 = vmax.f32 %v1111_v56, 0.0 }
 0x5e3   :  { %v1127_v62 = vmax.f32 %v1103_v60, 0.0  ;;  %v1137_v1 = vpack.c.bf16 %v1129_v61, %v1128_v63 }
 0x5e5   :  { %v1136_v0 = vpack.c.bf16 %v1127_v62, %v1126_v58 }
 0x5e7   :  { %1990 = vmatprep.mubr.bf16.mxu0 %v1136_v0 }
 0x5e8   :  { %1991 = vmatmul.mubr.bf16.gmra.mxu0 %v1137_v1 }
 0x690   :  { %v1980_v2 = vpop.f32.mrf.mxu0 }
 0x692   :  { %v1237_v3 = vpop.f32.mrf.mxu0 }
 0x694   :  { %v1981_v5 = vpop.f32.mrf.mxu0 }
 0x695   :  { %v1301_v24 = vpack.c.bf16 %v1981_v5, %v1980_v2 }
 0x696   :  { %v1240_v6 = vpop.f32.mrf.mxu0 }
 0x697   :  { %v1300_v25 = vpack.c.bf16 %v1240_v6, %v1237_v3 }
 0x698   :  { %v1984_v7 = vpop.f32.mrf.mxu0 }
 0x69a   :  { %v1253_v8 = vpop.f32.mrf.mxu0 }
 0x69c   :  { %v1985_v16 = vpop.f32.mrf.mxu0 }
 0x69d   :  { %v1303_v22 = vpack.c.bf16 %v1985_v16, %v1984_v7 }
 0x69e   :  { %v1256_v9 = vpop.f32.mrf.mxu0 }
 0x69f   :  { %v1302_v23 = vpack.c.bf16 %v1256_v9, %v1253_v8 }
 0x6a0   :  { %v1988_v10 = vpop.f32.mrf.mxu0 }
 0x6a2   :  { %v1269_v11 = vpop.f32.mrf.mxu0 }
 0x6a4   :  { %v1989_v12 = vpop.f32.mrf.mxu0 }
 0x6a5   :  { %v1305_v20 = vpack.c.bf16 %v1989_v12, %v1988_v10 }
 0x6a6   :  { %v1272_v4 = vpop.f32.mrf.mxu0 }
 0x6a7   :  { %v1304_v21 = vpack.c.bf16 %v1272_v4, %v1269_v11 }
 0x6a8   :  { %v1992_v13 = vpop.f32.mrf.mxu0 }
 0x6aa   :  { %v1285_v14 = vpop.f32.mrf.mxu0 }
 0x6ac   :  { %v1993_v15 = vpop.f32.mrf.mxu0 }
 0x6ad   :  { %v1307_v17 = vpack.c.bf16 %v1993_v15, %v1992_v13 }
 0x6ae   :  { %v1288_v18 = vpop.f32.mrf.mxu0 }
 0x6af   :  { %v1306_v19 = vpack.c.bf16 %v1288_v18, %v1285_v14  ;;  %1994 = vmatprep.subr.bf16.mxu1 %v1307_v17 }
 0x6b0   :  { %1995 = vmatpush3.bf16.msra.mxu1 %v1307_v17 }
 0x6b1   :  { %1996 = vmatprep.subr.bf16.mxu1 %v1306_v19 }
 0x6b4   :  { %1997 = vmatpush3.bf16.msra.mxu1 %v1306_v19 }
 0x6b5   :  { %1998 = vmatprep.subr.bf16.mxu1 %v1305_v20 }
 0x6b8   :  { %1999 = vmatpush3.bf16.msra.mxu1 %v1305_v20 }
 0x6b9   :  { %2000 = vmatprep.subr.bf16.mxu1 %v1304_v21 }
 0x6bc   :  { %2001 = vmatpush3.bf16.msra.mxu1 %v1304_v21 }
 0x6bd   :  { %2002 = vmatprep.subr.bf16.mxu1 %v1303_v22 }
 0x6c0   :  { %2003 = vmatpush3.bf16.msra.mxu1 %v1303_v22 }
 0x6c1   :  { %2004 = vmatprep.subr.bf16.mxu1 %v1302_v23 }
 0x6c4   :  { %2005 = vmatpush3.bf16.msra.mxu1 %v1302_v23 }
 0x6c5   :  { %2006 = vmatprep.subr.bf16.mxu1 %v1301_v24 }
 0x6c8   :  { %2007 = vmatpush3.bf16.msra.mxu1 %v1301_v24 }
 0x6c9   :  { %2008 = vmatprep.subr.bf16.mxu1 %v1300_v25 }
 0x6cc   :  { %2009 = vmatpush3.bf16.msra.mxu1 %v1300_v25 }
 0x6cf   :  { %2011 = vmatmul.mubr.bf16.vlgmr.msra.gmra.mxu1 %v2336_v46 }
 0x6d0   :  { %2014 = vmatprep.mubr.bf16.mxu1 %v2338_v47 }
 0x6d7   :  { %2015 = vmatmul.mubr.bf16.gmra.mxu1 %v2342_v48 }
 0x6d8   :  { %2018 = vmatprep.mubr.bf16.mxu1 %v2344_v49 }
 0x6df   :  { %2019 = vmatmul.mubr.bf16.gmra.mxu1 %v2348_v50 }
 0x6e0   :  { %2022 = vmatprep.mubr.bf16.mxu1 %v2350_v51 }
 0x6e7   :  { %2023 = vmatmul.mubr.bf16.gmra.mxu1 %v2354_v52 }
 0x78f   :  { %v2012_v26 = vpop.f32.mrf.mxu1 }
 0x790   :  { %v1357_v46 = vadd.f32 %v2012_v26, %v1562_v27 }
 0x791   :  { %v1348_v29 = vpop.f32.mrf.mxu1 }
 0x792   :  { %v1349_v28 = vadd.f32 %v1562_v27, %v1348_v29 }
 0x793   :  { %v2013_v30 = vpop.f32.mrf.mxu1 }
 0x794   :  { %v1360_v31 = vadd.f32 %v2013_v30, %v1562_v27 }
 0x795   :  { %v1351_v47 = vpop.f32.mrf.mxu1 }
 0x796   :  { %v1603_v48 = vpack.c.bf16 %v1360_v31, %v1357_v46  ;;  %v1352_v32 = vadd.f32 %v1562_v27, %v1351_v47 }
 0x797   :  { %v2016_v49 = vpop.f32.mrf.mxu1 }
 0x798   :  { %1635 = vst [vmem:[#allocation13 + $0x8] sm:$0xff] %v1603_v48   ;;  %v1598_v50 = vpack.c.bf16 %v1352_v32, %v1349_v28  ;;  %v1373_v52 = vadd.f32 %v2016_v49, %v1562_v27 }
 0x799   :  { %v1364_v33 = vpop.f32.mrf.mxu1 }
 0x79a   :  { %1599 = vst [vmem:[#allocation13] sm:$0xff] %v1598_v50   ;;  %v1365_v36 = vadd.f32 %v1562_v27, %v1364_v33 }
 0x79b   :  { %v2017_v51 = vpop.f32.mrf.mxu1 }
 0x79c   :  { %v1376_v34 = vadd.f32 %v2017_v51, %v1562_v27 }
 0x79d   :  { %v1367_v35 = vpop.f32.mrf.mxu1 }
 0x79e   :  { %v1613_v37 = vpack.c.bf16 %v1376_v34, %v1373_v52  ;;  %v1368_v38 = vadd.f32 %v1562_v27, %v1367_v35 }
 0x79f   :  { %v2020_v39 = vpop.f32.mrf.mxu1 }
 0x7a0   :  { %1637 = vst [vmem:[#allocation13 + $0x18] sm:$0xff] %v1613_v37   ;;  %v1608_v40 = vpack.c.bf16 %v1368_v38, %v1365_v36  ;;  %v1389_v43 = vadd.f32 %v2020_v39, %v1562_v27 }
 0x7a1   :  { %v1380_v41 = vpop.f32.mrf.mxu1 }
 0x7a2   :  { %1636 = vst [vmem:[#allocation13 + $0x10] sm:$0xff] %v1608_v40   ;;  %v1381_v53 = vadd.f32 %v1562_v27, %v1380_v41 }
 0x7a3   :  { %v2021_v42 = vpop.f32.mrf.mxu1 }
 0x7a4   :  { %v1392_v44 = vadd.f32 %v2021_v42, %v1562_v27 }
 0x7a5   :  { %v1383_v45 = vpop.f32.mrf.mxu1 }
 0x7a6   :  { %v1623_v54 = vpack.c.bf16 %v1392_v44, %v1389_v43  ;;  %v1384_v55 = vadd.f32 %v1562_v27, %v1383_v45 }
 0x7a7   :  { %v2024_v56 = vpop.f32.mrf.mxu1 }
 0x7a8   :  { %1639 = vst [vmem:[#allocation13 + $0x28] sm:$0xff] %v1623_v54   ;;  %v1618_v57 = vpack.c.bf16 %v1384_v55, %v1381_v53  ;;  %v1405_v61 = vadd.f32 %v2024_v56, %v1562_v27 }
 0x7a9   :  { %v1396_v59 = vpop.f32.mrf.mxu1 }
 0x7aa   :  { %1638 = vst [vmem:[#allocation13 + $0x20] sm:$0xff] %v1618_v57   ;;  %v1397_v63 = vadd.f32 %v1562_v27, %v1396_v59 }
 0x7ab   :  { %v2025_v60 = vpop.f32.mrf.mxu1 }
 0x7ac   :  { %v1408_v58 = vadd.f32 %v2025_v60, %v1562_v27 }
 0x7ad   :  { %v1399_v62 = vpop.f32.mrf.mxu1 }
 0x7ae   :  { %v1633_v0 = vpack.c.bf16 %v1408_v58, %v1405_v61  ;;  %v1400_v1 = vadd.f32 %v1562_v27, %v1399_v62 }
 0x7b0   :  { %1641 = vst [vmem:[#allocation13 + $0x38] sm:$0xff] %v1633_v0   ;;  %v1628_v2 = vpack.c.bf16 %v1400_v1, %v1397_v63 }
 0x7b2   :  { %1640 = vst [vmem:[#allocation13 + $0x30] sm:$0xff] %v1628_v2  }
 0x7b3   :  { %2214 = shalt.err (!%p2211_p6)
}
 0x7b4   :  { %1502 = dma.vmem_to_hbm [thread:$0]  %s1497_s26, 1024, %s2409_s10, [#allocation4], %s2235_s18, %s2235_s18, %s2236_s19  }
 0x7b5   :  { %2231 = dma.done.wait [#allocation4], 1024  }
 0x7b6   :  { %2232 = vsyncadd [#allocation4], 4294966272 }
 0x7b7   :  { %1506 = vsyncpa [#allocation3], 1 }
 0x7b8   :  { %1507 = vsyncpa [#allocation6], 1 }
 0x7b9   :  { %1508 = vsyncpa [#allocation9], 1 }
 0x7ba   :  { %1509 = vsyncpa [#allocation12], 1 }
 0x7bb   :  { %1510 = vsyncpa [#allocation4], 1 }

</bundles_post_ra>
